<compile_context>
chip_gen: v6e
topology: v6e:2x2x1
jax: 0.10.0
libtpu: 0.0.40
codegen_flags: <defaults>
</compile_context>

<pallas_src>
import functools

import jax
import jax.numpy as jnp
from jax.experimental import pallas as pl
from jax.experimental.pallas import tpu as pltpu


def _sage_kernel(x_ref, adj_ref, w_rel_ref, w_root_ref, b_ref, *rest,
                 tile_n, normalize, has_mask):
    # x_ref:      (1, Np, Fin_p)   full node features, resident across node axis
    # adj_ref:    (1, TN, Np)      row tile of the binary adjacency (bf16)
    # w_rel_ref:  (Fin_p, Fout_p)  W_rel^T, zero-padded
    # w_root_ref: (Fin_p, Fout_p)  W_root^T, zero-padded
    # b_ref:      (1, Fout_p)      bias (zero-padded), f32
    # [mask_ref]: (1, TN, 1)       optional node mask
    # o_ref:      (1, TN, Fout_p)
    if has_mask:
        mask_ref, o_ref = rest
    else:
        (o_ref,) = rest

    adj = adj_ref[0]                                     # (TN, Np) bf16 0/1
    x_full = x_ref[0]                                    # (Np, Fin_p)

    # Match the feature dtype once (no-op for bf16 x; f32 cast only when x is f32).
    adj_c = adj if adj.dtype == x_full.dtype else adj.astype(x_full.dtype)

    # Mean aggregation: (adj @ x) / clamp(deg, 1).  Degree comes from a second
    # (tiny) MXU dot with a ones vector -- exact f32 accumulation, no f32 temp
    # of the adjacency just for a reduction.
    agg = jnp.dot(adj_c, x_full, preferred_element_type=jnp.float32)    # (TN, Fin_p) f32
    ones = jnp.ones((adj_c.shape[-1], 1), dtype=adj_c.dtype)
    deg = jnp.dot(adj_c, ones, preferred_element_type=jnp.float32)      # (TN, 1) f32
    agg = agg * pl.reciprocal(jnp.maximum(deg, 1.0), approx=False)

    # Root-term rows: slice the resident x block (sublane-aligned slice, no
    # second DMA stream for x).
    row0 = pl.multiple_of(pl.program_id(1) * tile_n, tile_n)
    x_tile = x_ref[0, pl.ds(row0, tile_n), :]                            # (TN, Fin_p)

    # out = agg @ W_rel^T + x @ W_root^T + bias  (two dots, f32 accumulation,
    # no lane-axis concatenate / relayout).
    out = jnp.dot(agg.astype(w_rel_ref.dtype), w_rel_ref[...],
                  preferred_element_type=jnp.float32)
    out = out + jnp.dot(x_tile, w_root_ref[...],
                        preferred_element_type=jnp.float32)
    out = out + b_ref[...]                                               # (TN, Fout_p) f32

    if normalize:
        # F.normalize(out, p=2, dim=-1); padded output lanes are zero so they
        # do not perturb the norm.  max(sumsq, eps^2) == max(||out||, eps)^2.
        sumsq = jnp.sum(out * out, axis=-1, keepdims=True)
        out = out * jax.lax.rsqrt(jnp.maximum(sumsq, 1e-24))

    if has_mask:
        out = out * mask_ref[0].astype(out.dtype)

    o_ref[0] = out.astype(o_ref.dtype)


def _round_up(v, m):
    return ((v + m - 1) // m) * m


def dense_sage_conv(x, adj, w_rel, w_root, bias=None, mask=None,
                    normalize=False, node_tile=256):
    """Pallas implementation of DenseSAGEConv.forward.

    x:      (B, N, F_in) or (N, F_in)   float (bf16 recommended for large graphs)
    adj:    (B, N, N) or (N, N)         binary adjacency; batch broadcastable (size 1 ok)
    w_rel:  (F_out, F_in)               torch Linear weight layout (lin_rel)
    w_root: (F_out, F_in)               torch Linear weight layout (lin_root)
    bias:   (F_out,) or None            bias of lin_root
    mask:   optional (B, N) bool/float node mask
    node_tile: adjacency rows per grid step (use ~128 on v5e / large-N v7x).
    """
    x = jnp.asarray(x)
    adj = jnp.asarray(adj)
    if x.ndim == 2:
        x = x[None]
    if adj.ndim == 2:
        adj = adj[None]

    xb, N, F_in = x.shape
    ab = adj.shape[0]
    B = max(xb, ab)
    F_out = w_rel.shape[0]
    dtype = x.dtype

    # Lane-dense feature widths (zero-padded; padded weight rows/cols are zero
    # so results are exact).
    Fin_p = _round_up(F_in, 128)
    Fout_p = _round_up(F_out, 128)

    # Node-axis tile (multiple of 8) and padded node count.
    TN = max(8, node_tile - node_tile % 8)
    if N <= TN:
        TN = max(8, _round_up(N, 8))
    Np = _round_up(N, TN)
    n_tiles = Np // TN
    if B == 1 and n_tiles == 1 and TN > 8:
        # v7x has two TensorCores: make sure a B==1 launch still exposes >= 2
        # parallel blocks along the node axis.
        TN = max(8, _round_up((TN + 1) // 2, 8))
        Np = _round_up(N, TN)
        n_tiles = Np // TN

    pad_n = Np - N
    pad_f = Fin_p - F_in
    if pad_n or pad_f:
        x = jnp.pad(x, ((0, 0), (0, pad_n), (0, pad_f)))
    if pad_n:
        adj = jnp.pad(adj, ((0, 0), (0, pad_n), (0, pad_n)))
    # Binary (0/1) adjacency -> bf16 is exact and halves the dominant HBM stream.
    adj = adj.astype(jnp.bfloat16)

    # Pre-transposed, zero-padded weights in the compute dtype; bias in f32.
    w_rel_t = jnp.asarray(w_rel).T.astype(dtype)                      # (F_in, F_out)
    w_root_t = jnp.asarray(w_root).T.astype(dtype)
    w_rel_t = jnp.pad(w_rel_t, ((0, Fin_p - F_in), (0, Fout_p - F_out)))
    w_root_t = jnp.pad(w_root_t, ((0, Fin_p - F_in), (0, Fout_p - F_out)))
    b = (jnp.zeros((F_out,), jnp.float32) if bias is None
         else jnp.asarray(bias, jnp.float32))
    b = jnp.pad(b, (0, Fout_p - F_out)).reshape(1, Fout_p)

    has_mask = mask is not None
    if has_mask:
        m = jnp.asarray(mask).astype(dtype).reshape(B, N)
        if pad_n:
            m = jnp.pad(m, ((0, 0), (0, pad_n)))
        m = m.reshape(B, Np, 1)

    # Batch broadcast handled via index maps (no broadcast_to in HBM).
    x_idx = (lambda bb, nn: (bb, 0, 0)) if xb > 1 else (lambda bb, nn: (0, 0, 0))
    adj_idx = (lambda bb, nn: (bb, nn, 0)) if ab > 1 else (lambda bb, nn: (0, nn, 0))
    const2 = lambda bb, nn: (0, 0)

    in_specs = [
        pl.BlockSpec((1, Np, Fin_p), x_idx),          # full x, resident across nn
        pl.BlockSpec((1, TN, Np), adj_idx),           # adjacency row tile (bf16)
        pl.BlockSpec((Fin_p, Fout_p), const2),        # W_rel^T
        pl.BlockSpec((Fin_p, Fout_p), const2),        # W_root^T
        pl.BlockSpec((1, Fout_p), const2),            # bias
    ]
    args = [x, adj, w_rel_t, w_root_t, b]
    if has_mask:
        in_specs.append(pl.BlockSpec((1, TN, 1), lambda bb, nn: (bb, nn, 0)))
        args.append(m)

    # Explicit VMEM budget from the actual block sizes (double-buffered blocks
    # + f32 temporaries), so large tiles do not trip the default scoped limit.
    esize = jnp.dtype(dtype).itemsize
    per_step = (Np * Fin_p * esize                 # x block
                + TN * Np * 2                      # adj tile (bf16)
                + 2 * Fin_p * Fout_p * esize       # weights
                + Fout_p * 4                       # bias
                + TN * Fout_p * esize              # output tile
                + (TN * esize if has_mask else 0))
    temps = 4 * TN * (Fin_p + Fout_p) * 4          # f32 agg/out temporaries + margin
    vmem_limit = int(min(max(2 * per_step + temps + (8 << 20), 32 << 20), 100 << 20))

    kernel = functools.partial(_sage_kernel, tile_n=TN,
                               normalize=normalize, has_mask=has_mask)

    out = pl.pallas_call(
        kernel,
        out_shape=jax.ShapeDtypeStruct((B, Np, Fout_p), dtype),
        grid_spec=pltpu.PrefetchScalarGridSpec(
            num_scalar_prefetch=0,
            grid=(B, n_tiles),
            in_specs=in_specs,
            out_specs=pl.BlockSpec((1, TN, Fout_p), lambda bb, nn: (bb, nn, 0)),
        ),
        compiler_params=pltpu.CompilerParams(
            dimension_semantics=("parallel", "parallel"),
            vmem_limit_bytes=vmem_limit),
    )(*args)

    # TODO(synk): for very large N on v7x (64 MiB VMEM), add a third grid axis
    # that tiles the contraction over N with f32 agg/deg accumulators in
    # scratch, instead of keeping the full-N x block and (TN, N) adj tiles
    # resident.

    if pad_n or Fout_p != F_out:
        out = out[:, :N, :F_out]
    return out


def _reference(x, adj, w_rel, w_root, bias, mask=None, normalize=False):
    # Pure-JAX reference mirroring the PyTorch module.
    if x.ndim == 2:
        x = x[None]
    if adj.ndim == 2:
        adj = adj[None]
    B = max(x.shape[0], adj.shape[0])
    N = adj.shape[1]
    out = jnp.matmul(adj, x)
    out = out / jnp.maximum(jnp.sum(adj, axis=-1, keepdims=True), 1.0)
    out = out @ w_rel.T + x @ w_root.T + bias
    if normalize:
        out = out / jnp.maximum(jnp.linalg.norm(out, axis=-1, keepdims=True), 1e-12)
    if mask is not None:
        out = out * mask.reshape(B, N, 1).astype(out.dtype)
    return out


if __name__ == "__main__":
    B, N, F_in, F_out = 2, 16, 32, 32

    key = jax.random.PRNGKey(0)
    (k_x, k_adj, k_wr, k_wo, k_b, k_m,
     k_x3, k_adj3, k_wr3, k_wo3) = jax.random.split(key, 10)

    x = jax.random.normal(k_x, (B, N, F_in), dtype=jnp.float32)
    adj = (jax.random.uniform(k_adj, (B, N, N)) < 0.3).astype(jnp.float32)

    # Deterministic "reset_parameters"-style init (uniform in +/- 1/sqrt(fan_in)).
    bound = 1.0 / (F_in ** 0.5)
    w_rel = jax.random.uniform(k_wr, (F_out, F_in), minval=-bound, maxval=bound,
                               dtype=jnp.float32)
    w_root = jax.random.uniform(k_wo, (F_out, F_in), minval=-bound, maxval=bound,
                                dtype=jnp.float32)
    bias = jax.random.uniform(k_b, (F_out,), minval=-bound, maxval=bound,
                              dtype=jnp.float32)
    mask = jax.random.uniform(k_m, (B, N)) < 0.8

    # Case 1: plain forward, per-batch adjacency.
    out1 = jax.block_until_ready(
        dense_sage_conv(x, adj, w_rel, w_root, bias, normalize=False))
    ref1 = _reference(x, adj, w_rel, w_root, bias, normalize=False)
    assert out1.shape == (B, N, F_out)
    assert jnp.allclose(out1, ref1, atol=2e-3, rtol=2e-3), "mismatch vs reference (case 1)"

    # Case 2: shared (batch-1) adjacency, fused mask and L2 normalize.
    adj_shared = adj[:1]
    out2 = jax.block_until_ready(
        dense_sage_conv(x, adj_shared, w_rel, w_root, bias,
                        mask=mask, normalize=True))
    ref2 = _reference(x, jnp.broadcast_to(adj_shared, (B, N, N)),
                      w_rel, w_root, bias, mask=mask, normalize=True)
    assert out2.shape == (B, N, F_out)
    assert jnp.allclose(out2, ref2, atol=2e-3, rtol=2e-3), "mismatch vs reference (case 2)"

    # Case 3: 2-D inputs, N not a multiple of the tile (exercises N padding and
    # the B==1 two-tile split), F_out not a multiple of 128, no bias/mask.
    N3, F_out3 = 24, 48
    x3 = jax.random.normal(k_x3, (N3, F_in), dtype=jnp.float32)
    adj3 = (jax.random.uniform(k_adj3, (N3, N3)) < 0.3).astype(jnp.float32)
    w_rel3 = jax.random.uniform(k_wr3, (F_out3, F_in), minval=-bound, maxval=bound,
                                dtype=jnp.float32)
    w_root3 = jax.random.uniform(k_wo3, (F_out3, F_in), minval=-bound, maxval=bound,
                                 dtype=jnp.float32)
    out3 = jax.block_until_ready(
        dense_sage_conv(x3, adj3, w_rel3, w_root3, None))
    ref3 = _reference(x3, adj3, w_rel3, w_root3, jnp.zeros((F_out3,), jnp.float32))
    assert out3.shape == (1, N3, F_out3)
    assert jnp.allclose(out3, ref3, atol=2e-3, rtol=2e-3), "mismatch vs reference (case 3)"

    print("KERNEL_OK")
</pallas_src>

<mosaic_0001>
module attributes {stable_mosaic.version = 11 : i64} {
  func.func @_sage_kernel(%arg0: i32, %arg1: i32, %arg2: memref<1x16x128xf32, #tpu.memory_space<vmem>>, %arg3: memref<1x16x16xbf16, #tpu.memory_space<vmem>>, %arg4: memref<128x128xf32, #tpu.memory_space<vmem>>, %arg5: memref<128x128xf32, #tpu.memory_space<vmem>>, %arg6: memref<1x128xf32, #tpu.memory_space<vmem>>, %arg7: memref<1x16x128xf32, #tpu.memory_space<vmem>>) attributes {dimension_semantics = [#tpu.dimension_semantics<parallel>, #tpu.dimension_semantics<parallel>], iteration_bounds = array<i64: 2, 1>, scalar_prefetch = 0 : i64, scratch_operands = 0 : i64, tpu.core_type = #tpu.core_type<tc>, window_params = [{transform_indices = @transform_0, window_bounds = array<i64: 1, 16, 128>}, {transform_indices = @transform_1, window_bounds = array<i64: 1, 16, 16>}, {pipeline_mode = #tpu.pipeline_mode<synchronous>, transform_indices = @transform_2, window_bounds = array<i64: 128, 128>}, {pipeline_mode = #tpu.pipeline_mode<synchronous>, transform_indices = @transform_3, window_bounds = array<i64: 128, 128>}, {pipeline_mode = #tpu.pipeline_mode<synchronous>, transform_indices = @transform_4, window_bounds = array<i64: 1, 128>}, {transform_indices = @transform_5, window_bounds = array<i64: 1, 16, 128>}]} {
    %c0 = arith.constant 0 : index
    %c0_0 = arith.constant 0 : index
    %c0_1 = arith.constant 0 : index
    %0 = vector.load %arg3[%c0, %c0_0, %c0_1] : memref<1x16x16xbf16, #tpu.memory_space<vmem>>, vector<1x16x16xbf16>
    %1 = vector.shape_cast %0 : vector<1x16x16xbf16> to vector<16x16xbf16>
    %c0_2 = arith.constant 0 : index
    %c0_3 = arith.constant 0 : index
    %c0_4 = arith.constant 0 : index
    %2 = vector.load %arg2[%c0_2, %c0_3, %c0_4] : memref<1x16x128xf32, #tpu.memory_space<vmem>>, vector<1x16x128xf32>
    %3 = vector.shape_cast %2 : vector<1x16x128xf32> to vector<16x128xf32>
    %4 = arith.extf %1 : vector<16x16xbf16> to vector<16x16xf32>
    %cst = arith.constant dense<0.000000e+00> : vector<16x128xf32>
    %5 = tpu.matmul %4, %3, %cst {dimension_numbers = #tpu.dot_dimension_numbers<[1], [0], [0], [1], [0, 0, 1, 1], [], []>} : vector<16x16xf32>, vector<16x128xf32>, vector<16x128xf32> -> vector<16x128xf32>
    %cst_5 = arith.constant 1.000000e+00 : f32
    %6 = vector.broadcast %cst_5 : f32 to vector<16x1xf32>
    %cst_6 = arith.constant dense<0.000000e+00> : vector<16x1xf32>
    %7 = tpu.matmul %4, %6, %cst_6 {dimension_numbers = #tpu.dot_dimension_numbers<[1], [0], [0], [1], [0, 0, 1, 1], [], []>} : vector<16x16xf32>, vector<16x1xf32>, vector<16x1xf32> -> vector<16x1xf32>
    %cst_7 = arith.constant 1.000000e+00 : f32
    %8 = vector.broadcast %cst_7 : f32 to vector<16x1xf32>
    %9 = arith.maximumf %7, %8 : vector<16x1xf32>
    %10 = tpu.reciprocal %9 : vector<16x1xf32> -> vector<16x1xf32>
    %11 = vector.broadcast %10 : vector<16x1xf32> to vector<16x128xf32>
    %12 = arith.mulf %5, %11 : vector<16x128xf32>
    %c16_i32 = arith.constant 16 : i32
    %13 = arith.muli %arg1, %c16_i32 : i32
    %14 = tpu.assume_multiple %13, 16 : i32
    %c0_8 = arith.constant 0 : index
    %15 = arith.index_cast %14 : i32 to index
    %c0_9 = arith.constant 0 : index
    %16 = vector.load %arg2[%c0_8, %15, %c0_9] : memref<1x16x128xf32, #tpu.memory_space<vmem>>, vector<1x16x128xf32>
    %17 = vector.shape_cast %16 : vector<1x16x128xf32> to vector<16x128xf32>
    %c0_10 = arith.constant 0 : index
    %c0_11 = arith.constant 0 : index
    %18 = vector.load %arg4[%c0_10, %c0_11] : memref<128x128xf32, #tpu.memory_space<vmem>>, vector<128x128xf32>
    %cst_12 = arith.constant dense<0.000000e+00> : vector<16x128xf32>
    %19 = tpu.matmul %12, %18, %cst_12 {dimension_numbers = #tpu.dot_dimension_numbers<[1], [0], [0], [1], [0, 0, 1, 1], [], []>} : vector<16x128xf32>, vector<128x128xf32>, vector<16x128xf32> -> vector<16x128xf32>
    %c0_13 = arith.constant 0 : index
    %c0_14 = arith.constant 0 : index
    %20 = vector.load %arg5[%c0_13, %c0_14] : memref<128x128xf32, #tpu.memory_space<vmem>>, vector<128x128xf32>
    %cst_15 = arith.constant dense<0.000000e+00> : vector<16x128xf32>
    %21 = tpu.matmul %17, %20, %cst_15 {dimension_numbers = #tpu.dot_dimension_numbers<[1], [0], [0], [1], [0, 0, 1, 1], [], []>} : vector<16x128xf32>, vector<128x128xf32>, vector<16x128xf32> -> vector<16x128xf32>
    %22 = arith.addf %19, %21 : vector<16x128xf32>
    %c0_16 = arith.constant 0 : index
    %c0_17 = arith.constant 0 : index
    %23 = vector.load %arg6[%c0_16, %c0_17] : memref<1x128xf32, #tpu.memory_space<vmem>>, vector<1x128xf32>
    %24 = vector.broadcast %23 : vector<1x128xf32> to vector<16x128xf32>
    %25 = arith.addf %22, %24 : vector<16x128xf32>
    %c0_18 = arith.constant 0 : index
    %c0_19 = arith.constant 0 : index
    %c0_20 = arith.constant 0 : index
    %26 = vector.load %arg7[%c0_18, %c0_19, %c0_20] : memref<1x16x128xf32, #tpu.memory_space<vmem>>, vector<1x16x128xf32>
    %27 = vector.shape_cast %26 : vector<1x16x128xf32> to vector<16x128xf32>
    %28 = vector.shape_cast %25 : vector<16x128xf32> to vector<1x16x128xf32>
    tpu.vector_store %arg7[%c0_18, %c0_19, %c0_20], %28 {strides = array<i32>} : memref<1x16x128xf32, #tpu.memory_space<vmem>>, vector<1x16x128xf32>,
    return
  }
  func.func @transform_0(%arg0: i32, %arg1: i32) -> (i32, i32, i32) {
    %c0_i32 = arith.constant 0 : i32
    %c0_i32_0 = arith.constant 0 : i32
    %c0_i32_1 = arith.constant 0 : i32
    return %arg0, %c0_i32, %c0_i32_0 : i32, i32, i32
  }
  func.func @transform_1(%arg0: i32, %arg1: i32) -> (i32, i32, i32) {
    %c0_i32 = arith.constant 0 : i32
    %c0_i32_0 = arith.constant 0 : i32
    return %arg0, %arg1, %c0_i32 : i32, i32, i32
  }
  func.func @transform_2(%arg0: i32, %arg1: i32) -> (i32, i32) {
    %c0_i32 = arith.constant 0 : i32
    %c0_i32_0 = arith.constant 0 : i32
    %c0_i32_1 = arith.constant 0 : i32
    return %c0_i32, %c0_i32_0 : i32, i32
  }
  func.func @transform_3(%arg0: i32, %arg1: i32) -> (i32, i32) {
    %c0_i32 = arith.constant 0 : i32
    %c0_i32_0 = arith.constant 0 : i32
    %c0_i32_1 = arith.constant 0 : i32
    return %c0_i32, %c0_i32_0 : i32, i32
  }
  func.func @transform_4(%arg0: i32, %arg1: i32) -> (i32, i32) {
    %c0_i32 = arith.constant 0 : i32
    %c0_i32_0 = arith.constant 0 : i32
    %c0_i32_1 = arith.constant 0 : i32
    return %c0_i32, %c0_i32_0 : i32, i32
  }
  func.func @transform_5(%arg0: i32, %arg1: i32) -> (i32, i32, i32) {
    %c0_i32 = arith.constant 0 : i32
    %c0_i32_0 = arith.constant 0 : i32
    return %arg0, %arg1, %c0_i32 : i32, i32, i32
  }
}

</mosaic_0001>

<bundles_post_ra>
// kernel: tpu_custom_call.1
= control target key start
LH: loop header
LB: loop body
LE: loop exit
PB: predicated region body
PF: predicated region fallthrough
CT: control target
= control target key end

     0   :  { %s1597_s0 = inlined_call_operand.hbm [shape: f32[2,16,128], index: 0, kind: input, shape index: {}]   ;;  %s1598_s1 = inlined_call_operand.hbm [shape: bf16[2,16,16], index: 1, kind: input, shape index: {}]   ;;  %s1599_s2 = inlined_call_operand.hbm [shape: f32[128,128], index: 2, kind: input, shape index: {}]   ;;  %s1600_s3 = inlined_call_operand.hbm [shape: f32[128,128], index: 3, kind: input, shape index: {}]   ;;  %s1601_s4 = inlined_call_operand.vmem [shape: f32[1,128], index: 4, kind: input, shape index: {}]   ;;  %s1602_s5 = inlined_call_operand.hbm [shape: f32[2,16,128], index: 5, kind: output, shape index: {}]  }
   0x1   :  { %1609 = sst [smem:[#allocation20_spill]] %s1597_s0 }
   0x2   :  { %1610 = sst [smem:[#allocation21_spill]] %s1599_s2 }
   0x3   :  { %1611 = sst [smem:[#allocation22_spill]] %s1600_s3 }
   0x4   :  { %10 = vsyncpa [#allocation3], 0 }
   0x5   :  { %12 = vsyncpa [#allocation3 + $0x1], 0 }
   0x6   :  { %13 = vsyncpa [#allocation6], 0 }
   0x7   :  { %15 = vsyncpa [#allocation6 + $0x1], 0 }
   0x8   :  { %16 = vsyncpa [#allocation9], 0 }
   0x9   :  { %17 = vsyncpa [#allocation4], 0 }
   0xa   :  { %19 = vsyncpa [#allocation4 + $0x1], 0  ;;  %s1364_s18 = smov 0   ;;  %s1366_s19 = smov 0  }
   0xb   :  { %s1368_s20 = smov 0   ;;  %s1370_s21 = smov 0  }
   0xc   :  { %s1372_s22 = smov 0   ;;  %s1374_s23 = smov 0  }
   0xd LB: > { %1612 = sst [smem:[#allocation16_spill]] %s1307_s20  ;;  %s1395_s24 = sadd.s32 4294967295, %s1319_s23   ;;  %s1319_s23 = sphi %s1374_s23, %s25_s23   ;;  %s1315_s22 = sphi %s1372_s22, %s1635_s22   ;;  %s1311_s21 = sphi %s1370_s21, %s1634_s21   ;;  %s1307_s20 = sphi %s1368_s20, %s1630_s20   ;;  %s1303_s19 = sphi %s1366_s19, %s1633_s19   ;;  %s1299_s18 = sphi %s1364_s18, %s1632_s18  }
   0xe   : > { %1613 = sst [smem:[#allocation17_spill]] %s1319_s23  ;;  %s856_s25 = sadd.s32 4294967294, %s1319_s23  }
   0xf   : > { %p57_p0 = scmp.ne.s32.totalorder %s1303_s19, %s1299_s18  ;;  %p58_p1 = scmp.eq.s32.totalorder %s1395_s24, 0 }
  0x10   : > { %p174_p2 = scmp.eq.s32.totalorder %s1395_s24, 1  ;;  %p180_p3 = scmp.eq.s32.totalorder %s856_s25, 1 }
  0x11   : > { %p1404_p4 = por %p58_p1, %p57_p0  ;;  %p857_p5 = scmp.ge.s32.totalorder %s1319_s23, 1 }
  0x12   : > { %p1409_p6 = por %p180_p3, %p57_p0  ;;  %p187_p7 = scmp.lt.s32.totalorder %s1319_s23, 3 }
  0x13   : > { %s1321_s29 = smov [#allocation7]   ;;  %s1322_s7 = smov [#allocation8]  }
  0x14   : > { %p1414_p8 = pnand %p857_p5, %p187_p7  ;;  %s199_s30 = sshll.u32 %s1321_s29, 4  ;;  %s200_s30 = int_to_ptr.vmem [resolvable:$true] %s199_s30 }
  0x15   : > { %s212_s8 = sshll.u32 %s1322_s7, 4  ;;  %s1130_s9 = scalar_lea.vmem %s200_s30, 2048  ;;  %s213_s8 = int_to_ptr.vmem [resolvable:$true] %s212_s8 }
  0x16   : > { %p1032_p9 = pneg %p1414_p8  ;;  %p1131_p13 = scmp.ne.s32.totalorder %s200_s30, %s1130_s9 }
  0x17   : > { %p1138_p5 = scmp.lt.s32.totalorder %s200_s30, %s200_s30  ;;  %p1139_p7 = scmp.lt.s32.totalorder %s1130_s9, %s1130_s9 }
  0x18   : > { %p1423_p11 = pnand %p1032_p9, %p58_p1 }
  0x19   : > { %p1140_p10 = por %p1139_p7, %p1138_p5 }
  0x1a   : > { %p1121_p12 = pneg %p1423_p11 }
  0x1c   : > { %p1133_p0 = pnand %p1131_p13, %p1121_p12 }
  0x1e   : > { %p1134_p3 = pneg %p1133_p0 }
  0x20   : > { %p1141_p9 = pnand %p1140_p10, %p1134_p3 }
  0x22   : > { %1144 = shalt.err (!%p1141_p9)
}
  0x23   : > { %s1603_s10 = smov 128   ;;  %s1604_s11 = smov 8  }
  0x24   : > { %s1618_s2 = sld [smem:[#allocation21_spill]]  ;;  %s1156_s14 = scalar_lea.vmem %s213_s8, 2048 }
  0x25   : > { %p1157_p13 = scmp.ne.s32.totalorder %s213_s8, %s1156_s14  ;;  %p1164_p10 = scmp.lt.s32.totalorder %s213_s8, %s213_s8 }
  0x26   : > { %p1165_p3 = scmp.lt.s32.totalorder %s1156_s14, %s1156_s14 }
  0x27   : > { %p1159_p0 = pnand %p1157_p13, %p1121_p12 }
  0x28   : > { %p1166_p7 = por %p1165_p3, %p1164_p10 }
  0x29   : > { %p1160_p5 = pneg %p1159_p0 }
  0x2a   : > { %1035 = dma.hbm_to_vmem [thread:$0]  (!%p1423_p11), %s1618_s2, 2048, %s200_s30, [#allocation6], %s1603_s10, %s1603_s10, %s1604_s11  }
  0x2b   : > { %p1167_p9 = pnand %p1166_p7, %p1160_p5 }
  0x2d   : > { %1170 = shalt.err (!%p1167_p9)
}
  0x2e   : > { %s1619_s3 = sld [smem:[#allocation22_spill]]  ;;  %s37_s17 = sadd.s32 1, %s1315_s22 }
  0x2f   : > { %s44_s25 = sadd.s32 1, %s1307_s20  ;;  %p39_p12 = scmp.ge.s32.totalorder %s37_s17, 2 }
  0x30   : > { %p51_p13 = scmp.ne.s32.totalorder %s1307_s20, %s1303_s19  ;;  %p52_p0 = scmp.eq.s32.totalorder %s1319_s23, 0 }
  0x31   : > { %p1052_p5 = scmp.lt.s32.totalorder %s1319_s23, 2  ;;  %s1637_s17 = smov (%p39_p12, %s37_s17), 0 }
  0x32   : > { %1620 = sst [smem:[#allocation18_spill]] %s1637_s17  ;;  %p53_p10 = por %p52_p0, %p51_p13 }
  0x33   : > { %p1461_p3 = por %p174_p2, %p51_p13  ;;  %s41_s30 = ssub.s32 %s1315_s22, %s1637_s17 }
  0x34   : > { %1038 = dma.hbm_to_vmem [thread:$0]  (!%p1423_p11), %s1619_s3, 2048, %s213_s8, [#allocation9], %s1603_s10, %s1603_s10, %s1604_s11  }
  0x35   : > { %s1468_s6 = sand.u32 1, %s1307_s20   ;;  %p42_p11 = scmp.eq.s32.totalorder %s41_s30, 0 }
  0x36   : > { %s861_s7 = sshll.u32 %s1468_s6, 4  ;;  %s883_s8 = sshll.u32 %s1315_s22, 8 }
  0x37   : > { %s1473_s9 = scalar_select %p42_p11, %s1307_s20, %s44_s25  }
  0x38   : > { %s1623_s0 = sld [smem:[#allocation20_spill]]  ;;  %s233_s15 = scalar_lea.vmem [#allocation2], %s861_s7 }
  0x39   : > { %1622 = sst [smem:[#allocation19_spill]] %s1473_s9  ;;  %s240_s16 = sshll.u32 %s233_s15, 4  ;;  %s241_s16 = int_to_ptr.vmem [resolvable:$true] %s240_s16 }
  0x3a   : > { %p1480_p2 = pnand %p1052_p5, %p53_p10  ;;  %s250_s11 = sand.u32 1, %s1319_s23  }
  0x3b   : > { %s230_s30 = scalar_lea.sflag [#allocation3], %s1468_s6  ;;  %s1184_s25 = scalar_lea.vmem %s241_s16, 256 }
  0x3c   : > { %p1173_p7 = pneg %p1480_p2  ;;  %p1185_p9 = scmp.ne.s32.totalorder %s241_s16, %s1184_s25 }
  0x3d   : > { %s1325_s7 = smov [#allocation2]  }
  0x3e   : > { %s239_s14 = scalar_lea.hbm %s1623_s0, %s883_s8  ;;  %p1187_p12 = pnand %p1185_p9, %p1173_p7 }
  0x3f   : > { %s1189_s8 = sshll.u32 %s1325_s7, 4  ;;  %s1190_s8 = int_to_ptr.vmem [resolvable:$false] %s1189_s8 }
  0x40   : > { %p1188_p13 = pneg %p1187_p12  ;;  %s1191_s12 = scalar_lea.vmem %s1190_s8, 512 }
  0x41   : > { %p1192_p0 = scmp.lt.s32.totalorder %s241_s16, %s1190_s8  ;;  %p1193_p5 = scmp.lt.s32.totalorder %s1191_s12, %s1184_s25 }
  0x43   : > { %p1194_p10 = por %p1193_p5, %p1192_p0 }
  0x45   : > { %p1195_p11 = pnand %p1194_p10, %p1188_p13 }
  0x47   : > { %1198 = shalt.err (!%p1195_p11)
}
  0x48   : > { %s1625_s13 = smov 8   ;;  %s1626_s15 = smov 128  }
  0x49   : > { %1042 = dma.hbm_to_vmem [thread:$0]  (!%p1480_p2), %s239_s14, 256, %s241_s16, %s230_s30, %s1626_s15, %s1626_s15, %s1625_s13  }
  0x4a   : > { %s864_s0 = sshll.u32 %s1468_s6, 3  ;;  %s884_s2 = sshll.u32 %s1315_s22, 7 }
  0x4b   : > { %s262_s17 = scalar_lea.hbm %s1598_s1, %s884_s2  ;;  %s254_s8 = scalar_lea.vmem [#allocation5], %s864_s0 }
  0x4c   : > { %s263_s25 = sshll.u32 %s254_s8, 4  ;;  %s251_s12 = scalar_lea.sflag [#allocation6], %s250_s11  ;;  %s264_s25 = int_to_ptr.vmem [resolvable:$true] %s263_s25 }
  0x4d   : > { %s1212_s9 = scalar_lea.vmem %s264_s25, 128  ;;  %s1326_s20 = smov [#allocation5]  }
  0x4e   : > { %p1213_p9 = scmp.ne.s32.totalorder %s264_s25, %s1212_s9  ;;  %s1217_s23 = sshll.u32 %s1326_s20, 4  ;;  %s1218_s23 = int_to_ptr.vmem [resolvable:$false] %s1217_s23 }
  0x4f   : > { %s1219_s14 = scalar_lea.vmem %s1218_s23, 256  ;;  %p1220_p0 = scmp.lt.s32.totalorder %s264_s25, %s1218_s23 }
  0x50   : > { %p1215_p12 = pnand %p1213_p9, %p1173_p7  ;;  %p1221_p5 = scmp.lt.s32.totalorder %s1219_s14, %s1212_s9 }
  0x52   : > { %p1216_p13 = pneg %p1215_p12  ;;  %p1222_p10 = por %p1221_p5, %p1220_p0 }
  0x54   : > { %p1223_p11 = pnand %p1222_p10, %p1216_p13 }
  0x56   : > { %1226 = shalt.err (!%p1223_p11)
}
  0x57   : > { %s1327_s2 = smov 64   ;;  %s1328_s0 = smov 4  }
  0x58   : > { %1045 = dma.hbm_to_vmem [thread:$0]  (!%p1480_p2), %s262_s17, 128, %s264_s25, %s251_s12, %s1327_s2, %s1327_s2, %s1328_s0  }
  0x59   : > { %275 = sbr.rel (%p1414_p8) target bundleno = 661 (0x295), region = 40  ;;  %s1509_s3 = sand.u32 (!%p1414_p8), 1, %s1303_s19  }
  0x5a   : > { %s868_s20 = sshll.u32 (!%p1414_p8), %s1509_s3, 4  ;;  %s278_s23 = scalar_lea.sflag (!%p1414_p8), [#allocation3], %s1509_s3 }
  0x5b   : > { %s281_s11 = scalar_lea.vmem (!%p1414_p8), [#allocation2], %s868_s20 }
  0x5e   : > { %1278 = dma.done.wait (%p1404_p4), %s278_s23, 256  }
  0x5f   : > { %1280 = vsyncadd (%p1404_p4), %s278_s23, 4294967040  ;;  %s286_s28 = sand.u32 1, %s1395_s24   ;;  %s869_s10 = sshll.u32 %s1509_s3, 3 }
  0x60   : > { %s287_s17 = scalar_lea.sflag [#allocation6], %s286_s28  ;;  %s290_s6 = scalar_lea.vmem [#allocation5], %s869_s10 }
  0x61   : > { %1282 = dma.done.wait (%p1404_p4), %s287_s17, 128  }
  0x62   : > { %1284 = vsyncadd (%p1404_p4), %s287_s17, 4294967168 }
  0x63   : > { %1286 = dma.done.wait (%p58_p1), [#allocation6], 2048  }
  0x64   : > { %1288 = vsyncadd (%p58_p1), [#allocation6], 4294965248 }
  0x65   : > { %1290 = dma.done.wait (%p58_p1), [#allocation9], 2048  }
  0x66   : > { %1292 = vsyncadd (%p58_p1), [#allocation9], 4294965248  ;;  %v1329_v0 = vmov 1.0   ;;  %v887_v1 = vld [vmem:[%s290_s6] sm:$0xff]   ;;  %vm338_vm0 = vcmask 130048   ;;  %v1533_v2 = vld [vmem:[%s281_s11 + $0x8] sm:$0xff] }
  0x67   : > { %941 = vmatprep.subr.mxu1 %v1329_v0  ;;  %v334_v3 = vld [vmem:[%s281_s11] sm:$0xff]  ;;  %v888_v4 = vunpack.c.l.bf16 %v887_v1  ;;  %v889_v5 = vunpack.c.h.bf16 %v887_v1  ;;  %934 = vmatprep.subr.mxu0 %v1533_v2  ;;  %v1330_v6 = vmov 0   ;;  %v546_v7 = vld [vmem:[#allocation8 + $0x78] sm:$0xff]  ;;  %v544_v11 = vld [vmem:[#allocation8 + $0x68] sm:$0xff]  ;;  %s329_s9 = scalar_lea.vmem [#allocation10], %s868_s20  ;;  %s885_s30 = sshll.u32 %s1311_s21, 8 }
  0x68   : > { %942 = vmatpush3.msra.mxu1 %v1329_v0  ;;  %935 = vmatpush3.msra.mxu0 %v1533_v2  ;;  %v545_v8 = vld [vmem:[#allocation8 + $0x70] sm:$0xff]  ;;  %v530_v9 = vld [vmem:[#allocation7 + $0x78] sm:$0xff]  ;;  %v528_v12 = vld [vmem:[#allocation7 + $0x68] sm:$0xff]  ;;  %s724_s16 = sshll.u32 %s329_s9, 4  ;;  %s1549_s7 = scalar_lea.hbm %s1602_s5, %s885_s30  ;;  %s1544_s16 = int_to_ptr.vmem [resolvable:$true] %s724_s16 }
  0x69   : > { %943 = vmatprep.subr.mxu1 %v1329_v0  ;;  %945 = vmatprep.mubr.msk.f32.mxu1 %vm338_vm0, %v888_v4  ;;  %v529_v10 = vld [vmem:[#allocation7 + $0x70] sm:$0xff]  ;;  %v543_v13 = vld [vmem:[#allocation8 + $0x60] sm:$0xff]  ;;  %v542_v15 = vld [vmem:[#allocation8 + $0x58] sm:$0xff]  ;;  %s709_s8 = scalar_lea.sflag [#allocation4], %s1509_s3  ;;  %s1227_s25 = scalar_lea.vmem %s1544_s16, 256 }
  0x6a   : > { %944 = vmatpush3.msra.mxu1 %v1329_v0  ;;  %936 = vmatprep.subr.mxu0 %v334_v3  ;;  %v527_v14 = vld [vmem:[#allocation7 + $0x60] sm:$0xff]  ;;  %v526_v16 = vld [vmem:[#allocation7 + $0x58] sm:$0xff]  ;;  %v541_v17 = vld [vmem:[#allocation8 + $0x50] sm:$0xff]  ;;  %p1228_p1 = scmp.ne.s32.totalorder %s1544_s16, %s1227_s25  ;;  %s1331_s21 = smov [#allocation10]  }
  0x6b   : > { %946 = vmatmul.mubr.msk.f32.vlgmr.msra.gmra.mxu1 %vm338_vm0, %v889_v5  ;;  %937 = vmatpush3.msra.mxu0 %v334_v3  ;;  %v525_v18 = vld [vmem:[#allocation7 + $0x50] sm:$0xff]  ;;  %v540_v19 = vld [vmem:[#allocation8 + $0x48] sm:$0xff]  ;;  %v539_v21 = vld [vmem:[#allocation8 + $0x40] sm:$0xff]  ;;  %s1231_s12 = sshll.u32 %s1331_s21, 4  ;;  %s1232_s12 = int_to_ptr.vmem [resolvable:$false] %s1231_s12 }
  0x6c   : > { %938 = vmatprep.mubr.msk.f32.mxu0 %vm338_vm0, %v888_v4  ;;  %1114 = vset.pattern.permute.xlu0 %v1330_v6  ;;  %v524_v20 = vld [vmem:[#allocation7 + $0x48] sm:$0xff]  ;;  %v523_v22 = vld [vmem:[#allocation7 + $0x40] sm:$0xff]  ;;  %v538_v23 = vld [vmem:[#allocation8 + $0x38] sm:$0xff]  ;;  %p1229_p4 = pnand %p1228_p1, %p1461_p3  ;;  %s1233_s14 = scalar_lea.vmem %s1232_s12, 512 }
  0x6d   : > { %939 = vmatmul.mubr.msk.f32.vlgmr.msra.gmra.mxu0 %vm338_vm0, %v889_v5  ;;  %948 = vmatprep.subr.mxu0 %v546_v7  ;;  %v522_v24 = vld [vmem:[#allocation7 + $0x38] sm:$0xff]  ;;  %v537_v25 = vld [vmem:[#allocation8 + $0x30] sm:$0xff]  ;;  %v536_v27 = vld [vmem:[#allocation8 + $0x28] sm:$0xff]  ;;  %p1234_p2 = scmp.lt.s32.totalorder %s1544_s16, %s1232_s12  ;;  %p1235_p7 = scmp.lt.s32.totalorder %s1233_s14, %s1227_s25 }
  0x6e   : > { %980 = vmatprep.mubr.f32.mxu0 %v334_v3  ;;  %983 = vmatprep.subr.mxu1 %v530_v9  ;;  %v521_v26 = vld [vmem:[#allocation7 + $0x30] sm:$0xff]  ;;  %v520_v28 = vld [vmem:[#allocation7 + $0x28] sm:$0xff]  ;;  %v535_v29 = vld [vmem:[#allocation8 + $0x20] sm:$0xff]  ;;  %p1230_p8 = pneg %p1229_p4 }
  0x6f   : > { %949 = vmatpush3.msra.mxu0 %v546_v7  ;;  %984 = vmatpush3.msra.mxu1 %v530_v9  ;;  %v519_v30 = vld [vmem:[#allocation7 + $0x20] sm:$0xff]  ;;  %v534_v31 = vld [vmem:[#allocation8 + $0x18] sm:$0xff]  ;;  %v533_v33 = vld [vmem:[#allocation8 + $0x10] sm:$0xff]  ;;  %p1236_p9 = por %p1235_p7, %p1234_p2 }
  0x70   : > { %950 = vmatprep.subr.mxu0 %v545_v8  ;;  %985 = vmatprep.subr.mxu1 %v529_v10  ;;  %v518_v32 = vld [vmem:[#allocation7 + $0x18] sm:$0xff]  ;;  %v532_v38 = vld [vmem:[#allocation8 + $0x8] sm:$0xff]  ;;  %v517_v39 = vld [vmem:[#allocation7 + $0x10] sm:$0xff] }
  0x71   : > { %951 = vmatpush3.msra.mxu0 %v545_v8  ;;  %986 = vmatpush3.msra.mxu1 %v529_v10  ;;  %v531_v40 = vld [vmem:[#allocation8] sm:$0xff]  ;;  %v516_v41 = vld [vmem:[#allocation7 + $0x8] sm:$0xff]  ;;  %v877_v53 = vld [vmem:[%s1601_s4] ss:$0 sm:$0xff]  ;;  %p1237_p12 = pnand %p1236_p9, %p1230_p8 }
  0x72   : > { %952 = vmatprep.subr.mxu0 %v544_v11  ;;  %987 = vmatprep.subr.mxu1 %v528_v12  ;;  %v515_v43 = vld [vmem:[#allocation7] sm:$0xff] }
  0x73   : > { %953 = vmatpush3.msra.mxu0 %v544_v11  ;;  %988 = vmatpush3.msra.mxu1 %v528_v12 }
  0x74   : > { %954 = vmatprep.subr.mxu0 %v543_v13  ;;  %989 = vmatprep.subr.mxu1 %v527_v14 }
  0x75   : > { %955 = vmatpush3.msra.mxu0 %v543_v13  ;;  %990 = vmatpush3.msra.mxu1 %v527_v14 }
  0x76   : > { %956 = vmatprep.subr.mxu0 %v542_v15  ;;  %991 = vmatprep.subr.mxu1 %v526_v16 }
  0x77   : > { %957 = vmatpush3.msra.mxu0 %v542_v15  ;;  %992 = vmatpush3.msra.mxu1 %v526_v16 }
  0x78   : > { %958 = vmatprep.subr.mxu0 %v541_v17  ;;  %993 = vmatprep.subr.mxu1 %v525_v18 }
  0x79   : > { %959 = vmatpush3.msra.mxu0 %v541_v17  ;;  %994 = vmatpush3.msra.mxu1 %v525_v18 }
  0x7a   : > { %960 = vmatprep.subr.mxu0 %v540_v19  ;;  %995 = vmatprep.subr.mxu1 %v524_v20 }
  0x7b   : > { %961 = vmatpush3.msra.mxu0 %v540_v19  ;;  %996 = vmatpush3.msra.mxu1 %v524_v20 }
  0x7c   : > { %962 = vmatprep.subr.mxu0 %v539_v21  ;;  %997 = vmatprep.subr.mxu1 %v523_v22 }
  0x7d   : > { %963 = vmatpush3.msra.mxu0 %v539_v21  ;;  %998 = vmatpush3.msra.mxu1 %v523_v22 }
  0x7e   : > { %964 = vmatprep.subr.mxu0 %v538_v23  ;;  %999 = vmatprep.subr.mxu1 %v522_v24 }
  0x7f   : > { %965 = vmatpush3.msra.mxu0 %v538_v23  ;;  %1000 = vmatpush3.msra.mxu1 %v522_v24 }
  0x80   : > { %966 = vmatprep.subr.mxu0 %v537_v25  ;;  %1001 = vmatprep.subr.mxu1 %v521_v26 }
  0x81   : > { %967 = vmatpush3.msra.mxu0 %v537_v25  ;;  %1002 = vmatpush3.msra.mxu1 %v521_v26 }
  0x82   : > { %968 = vmatprep.subr.mxu0 %v536_v27  ;;  %1003 = vmatprep.subr.mxu1 %v520_v28 }
  0x83   : > { %969 = vmatpush3.msra.mxu0 %v536_v27  ;;  %1004 = vmatpush3.msra.mxu1 %v520_v28 }
  0x84   : > { %970 = vmatprep.subr.mxu0 %v535_v29  ;;  %1005 = vmatprep.subr.mxu1 %v519_v30 }
  0x85   : > { %971 = vmatpush3.msra.mxu0 %v535_v29  ;;  %1006 = vmatpush3.msra.mxu1 %v519_v30 }
  0x86   : > { %972 = vmatprep.subr.mxu0 %v534_v31  ;;  %1007 = vmatprep.subr.mxu1 %v518_v32 }
  0x87   : > { %973 = vmatpush3.msra.mxu0 %v534_v31  ;;  %1008 = vmatpush3.msra.mxu1 %v518_v32 }
  0x88   : > { %974 = vmatprep.subr.mxu0 %v533_v33  ;;  %1009 = vmatprep.subr.mxu1 %v517_v39 }
  0x89   : > { %975 = vmatpush3.msra.mxu0 %v533_v33  ;;  %1010 = vmatpush3.msra.mxu1 %v517_v39 }
  0x8a   : > { %976 = vmatprep.subr.mxu0 %v532_v38  ;;  %1011 = vmatprep.subr.mxu1 %v516_v41 }
  0x8b   : > { %977 = vmatpush3.msra.mxu0 %v532_v38  ;;  %1012 = vmatpush3.msra.mxu1 %v516_v41 }
  0x8c   : > { %978 = vmatprep.subr.mxu0 %v531_v40  ;;  %1013 = vmatprep.subr.mxu1 %v515_v43 }
  0x8d   : > { %979 = vmatpush3.msra.mxu0 %v531_v40  ;;  %1014 = vmatpush3.msra.mxu1 %v515_v43 }
  0x8e   : > { %981 = vmatmul.mubr.f32.vlgmr.msra.gmra.mxu0 %v1533_v2 }
 0x12b   : > { %v947_v34 = vpop.f32.mrf.mxu1 }
 0x12c   : > { %v496_v37 = vmax.f32 %v947_v34, 1.0 }
 0x12d   : > { %v486_v35 = vpop.f32.mrf.mxu1  ;;  %v940_v45 = vpop.f32.mrf.mxu0 }
 0x12e   : > { %v495_v36 = vmax.f32 %v486_v35, 1.0 }
 0x12f   : > { %v411_v46 = vpop.f32.mrf.mxu0 }
 0x130   : > { %1115 = vrcp.f32 %v495_v36 }
 0x131   : > { %1117 = vrcp.f32 %v496_v37 }
 0x13d   : > { %v1116_v42 = vpop.eup %1115 }
 0x13e   : > { %501 = vperm.xlu0 %1114, %v1116_v42   ;;  %v1118_v44 = vpop.eup %1117 }
 0x142   : > { %506 = vperm.xlu0 %1114, %v1118_v44  }
 0x14e   : > { %v982_v51 = vpop.f32.mrf.mxu0 }
 0x150   : > { %v613_v55 = vpop.f32.mrf.mxu0 }
 0x1b9   : > { %v502_v47 = vpop.permute.xlu0 %501 }
 0x1ba   : > { %v509_v48 = vmul.f32 %v502_v47, %v411_v46 }
 0x1bc   : > { %1015 = vmatprep.mubr.f32.mxu1 %v509_v48 }
 0x1bd   : > { %v507_v49 = vpop.permute.xlu0 %506 }
 0x1be   : > { %v510_v50 = vmul.f32 %v940_v45, %v507_v49 }
 0x1c0   : > { %1016 = vmatmul.mubr.f32.vlgmr.msra.gmra.mxu1 %v510_v50 }
 0x280   : > { %v1017_v52 = vpop.f32.mrf.mxu1 }
 0x281   : > { %v694_v54 = vadd.f32 %v1017_v52, %v982_v51 }
 0x282   : > { %v688_v56 = vpop.f32.mrf.mxu1 }
 0x283   : > { %v705_v57 = vadd.f32 %v877_v53, %v694_v54  ;;  %v689_v58 = vadd.f32 %v688_v56, %v613_v55 }
 0x285   : > { %707 = vst [vmem:[%s329_s9 + $0x8] sm:$0xff] %v705_v57  ;;  %v704_v59 = vadd.f32 %v877_v53, %v689_v58 }
 0x287   : > { %706 = vst [vmem:[%s329_s9] sm:$0xff] %v704_v59 }
 0x288   : > { %1240 = shalt.err (!%p1237_p12)
}
 0x289   : > { %s1241_s2 = scalar_lea.hbm %s1549_s7, 256  ;;  %s1245_s23 = scalar_lea.hbm %s1602_s5, 512 }
 0x28a   : > { %p1242_p13 = scmp.ne.s32.totalorder %s1549_s7, %s1241_s2  ;;  %p1246_p10 = scmp.lt.s32.totalorder %s1549_s7, %s1602_s5 }
 0x28b   : > { %p1247_p11 = scmp.lt.s32.totalorder %s1245_s23, %s1241_s2 }
 0x28c   : > { %p1243_p0 = pnand %p1242_p13, %p1461_p3 }
 0x28d   : > { %p1248_p1 = por %p1247_p11, %p1246_p10 }
 0x28e   : > { %p1244_p5 = pneg %p1243_p0 }
 0x290   : > { %p1249_p4 = pnand %p1248_p1, %p1244_p5 }
 0x292   : > { %1252 = shalt.err (!%p1249_p4)
}
 0x293   : > { %s1332_s10 = smov 128   ;;  %s1333_s17 = smov 8  }
 0x294   : > { %1030 = dma.vmem_to_hbm [thread:$0]  (%p1461_p3), %s1544_s16, 256, %s1549_s7, %s709_s8, %s1332_s10, %s1332_s10, %s1333_s17  }
 0x295 PF: > { %s1627_s6 = sld [smem:[#allocation17_spill]]  ;;  %s739_s24 = sand.u32 1, %s1299_s18  }
 0x296   : > { %s740_s26 = scalar_lea.sflag [#allocation4], %s739_s24 }
 0x29b   : > { %p1628_p8 = scmp.ge.s32.totalorder %s1627_s6, 2 }
 0x29d   : > { %p1047_p2 = pnand %p1628_p8, %p1409_p6 }
 0x29f   : > { %p1048_p7 = pneg %p1047_p2 }
 0x2a1   : > { %1294 = dma.done.wait (%p1048_p7), %s740_s26, 256  }
 0x2a2   : > { %1296 = vsyncadd (%p1048_p7), %s740_s26, 4294967040  ;;  %s25_s23 = sadd.s32 1, %s1627_s6   ;;  %s1629_s9 = sld [smem:[#allocation16_spill]] }
 0x2a3   : > { %p22_p9 = scmp.ge.s32.totalorder %s25_s23, 4   ;;  %s1630_s20 = sld [smem:[#allocation19_spill]] }
 0x2a4   : > { %s1631_s29 = sld [smem:[#allocation18_spill]]  ;;  %s1632_s18 = smov %s1303_s19 }
 0x2a5   : > { %s1634_s21 = smov %s1315_s22 }
 0x2a6   :  { %24 = sbr.rel (!%p22_p9) target bundleno = 13 (0xd), region = 107 }
 0x2a8   : > { %s1633_s19 = smov %s1629_s9 }
 0x2aa   : > { %s1635_s22 = smov %s1631_s29 }
 0x2ab   :  { %745 = vsyncpa [#allocation3], 1 }
 0x2ac   :  { %747 = vsyncpa [#allocation3 + $0x1], 1 }
 0x2ad   :  { %748 = vsyncpa [#allocation6], 1 }
 0x2ae   :  { %750 = vsyncpa [#allocation6 + $0x1], 1 }
 0x2af   :  { %751 = vsyncpa [#allocation9], 1 }
 0x2b0   :  { %752 = vsyncpa [#allocation4], 1 }
 0x2b1   :  { %754 = vsyncpa [#allocation4 + $0x1], 1 }

</bundles_post_ra>
